<compile_context>
chip_gen: v7x
topology: tpu7x:2x2x1
jax: 0.10.0
libtpu: 0.0.40
codegen_flags: <defaults>
</compile_context>

<pallas_src>
import jax
import jax.numpy as jnp
from jax.experimental import pallas as pl
from jax.experimental.pallas import tpu as pltpu

_LANES = 128


def _round_up(x, m):
    return (x + m - 1) // m * m


def _mlp_policy_kernel(x_ref,
                       w0_ref, b0_ref,
                       w1_ref, b1_ref,
                       wo_ref, bo_ref,
                       mean_ref):
    # Hidden layer 0: tanh(x @ W0 + b0); bf16 MXU operands, f32 accumulate.
    x = x_ref[...].astype(jnp.bfloat16)          # no-op if obs already bf16
    h = jnp.tanh(
        jnp.dot(x, w0_ref[...], preferred_element_type=jnp.float32)
        + b0_ref[...]
    )
    # Hidden layer 1: tanh(h @ W1 + b1)
    h = jnp.tanh(
        jnp.dot(h.astype(jnp.bfloat16), w1_ref[...],
                preferred_element_type=jnp.float32)
        + b1_ref[...]
    )
    # Output layer (identity activation).  wo/bo are zero-padded to 128 lanes
    # so this store is a full-width, unmasked (tb, 128) write.
    mean = (
        jnp.dot(h.astype(jnp.bfloat16), wo_ref[...],
                preferred_element_type=jnp.float32)
        + bo_ref[...]
    )
    mean_ref[...] = mean.astype(mean_ref.dtype)


def mlp_policy_forward(obs, params, *, tb_max=4096):
    """Returns (mean, std) parameterizing Normal(loc=mean, scale=std).

    mean : (batch, ac_dim)  -- computed by the Pallas kernel
    std  : (1, ac_dim)      -- exp(logstd), obs-independent (broadcasts in
                               the Normal distribution; not materialized at
                               full batch size).
    """
    w0, b0, w1, b1, wo, bo, logstd = params
    batch, ob_dim = obs.shape
    size = w0.shape[1]
    ac_dim = wo.shape[1]

    # --- Lane-dense output: pad ac_dim up to a multiple of 128 lanes. -------
    acp = max(_LANES, _round_up(ac_dim, _LANES))
    if acp != ac_dim:
        wo_p = jnp.pad(wo, ((0, 0), (0, acp - ac_dim)))
        bo_p = jnp.pad(bo, ((0, 0), (0, acp - ac_dim)))
    else:
        wo_p, bo_p = wo, bo

    # --- Batch tile selection. ----------------------------------------------
    # ~half the batch (so >=2 tiles for megacore sharding on v7x), rounded to
    # the 8-row sublane granule, capped at tb_max for a safe VMEM footprint.
    tb = min(tb_max, _round_up(pl.cdiv(batch, 2), 8))
    if tb >= batch:
        tb = batch          # single full-extent block (always layout-legal)
    grid = (pl.cdiv(batch, tb),)   # ragged last block handled by Pallas

    tiled_in = pl.BlockSpec((tb, ob_dim), lambda i: (i, 0))
    tiled_out = pl.BlockSpec((tb, acp), lambda i: (i, 0))
    resident = lambda a: pl.BlockSpec(a.shape, lambda i: (0, 0))  # VMEM-resident

    flops = 2 * batch * (ob_dim * size + size * size + size * acp)
    bytes_accessed = (
        obs.size * obs.dtype.itemsize
        + sum(int(a.size) * a.dtype.itemsize
              for a in (w0, b0, w1, b1, wo_p, bo_p))
        + batch * acp * 4
    )
    cost = pl.CostEstimate(
        flops=flops,
        transcendentals=2 * batch * size,   # two tanh layers
        bytes_accessed=bytes_accessed,
    )

    mean_padded = pl.pallas_call(
        _mlp_policy_kernel,
        out_shape=jax.ShapeDtypeStruct((batch, acp), jnp.float32),
        grid=grid,
        in_specs=[
            tiled_in,
            resident(w0), resident(b0),
            resident(w1), resident(b1),
            resident(wo_p), resident(bo_p),
        ],
        out_specs=tiled_out,
        compiler_params=pltpu.CompilerParams(
            dimension_semantics=("parallel",),
            vmem_limit_bytes=32 * 1024 * 1024,
        ),
        cost_estimate=cost,
    )(obs, w0, b0, w1, b1, wo_p, bo_p)

    mean = mean_padded[:, :ac_dim]
    # logstd.expand_as(mean); torch.exp(logstd): obs-independent -> keep tiny.
    std = jnp.exp(logstd)
    return mean, std


def init_params(key, ob_dim, ac_dim, size):
    """Deterministic synthetic init matching the module's parameter shapes
    (n_layers=2 hidden layers of width `size`, output layer, plus logstd).
    Weights stored in bf16 (MXU-native); biases / logstd kept f32."""
    ks = jax.random.split(key, 6)
    scale = 0.1
    w0 = (scale * jax.random.normal(ks[0], (ob_dim, size), jnp.float32)).astype(jnp.bfloat16)
    b0 = scale * jax.random.normal(ks[1], (1, size), jnp.float32)
    w1 = (scale * jax.random.normal(ks[2], (size, size), jnp.float32)).astype(jnp.bfloat16)
    b1 = scale * jax.random.normal(ks[3], (1, size), jnp.float32)
    wo = (scale * jax.random.normal(ks[4], (size, ac_dim), jnp.float32)).astype(jnp.bfloat16)
    bo = scale * jax.random.normal(ks[5], (1, ac_dim), jnp.float32)
    logstd = jnp.zeros((1, ac_dim), jnp.float32)  # nn.Parameter(torch.zeros((1, ac_dim)))
    return (w0, b0, w1, b1, wo, bo, logstd)


def reference_forward(obs, params):
    """Pure-f32 reference (weights upcast from bf16 storage)."""
    w0, b0, w1, b1, wo, bo, logstd = params
    h = jnp.tanh(obs @ w0.astype(jnp.float32) + b0)
    h = jnp.tanh(h @ w1.astype(jnp.float32) + b1)
    mean = h @ wo.astype(jnp.float32) + bo
    std = jnp.exp(logstd)
    return mean, std


if __name__ == "__main__":
    # Small shapes consistent with an MLP policy: batch=8, ob_dim=16,
    # ac_dim=4, n_layers=2, size=32.
    key = jax.random.PRNGKey(0)
    k_obs, k_params = jax.random.split(key)

    batch, ob_dim, ac_dim, size = 8, 16, 4, 32
    obs = jax.random.normal(k_obs, (batch, ob_dim), jnp.float32)
    params = init_params(k_params, ob_dim, ac_dim, size)

    mean, std = mlp_policy_forward(obs, params)
    mean = jax.block_until_ready(mean)
    std = jax.block_until_ready(std)

    mean_ref, std_ref = reference_forward(obs, params)
    # bf16 matmul operands with f32 accumulation -> ~1e-2-level agreement vs
    # the f32 reference.
    assert mean.shape == (batch, ac_dim), mean.shape
    assert std.shape == (1, ac_dim), std.shape
    assert jnp.allclose(mean, mean_ref, atol=2e-2, rtol=2e-2), "mean mismatch"
    assert jnp.allclose(std, std_ref, atol=1e-6), "std mismatch"

    # TODO(synk): distributions.Normal rsample/log_prob (and the optimizer /
    # update path) live outside the forward hot path; the kernel returns
    # (mean, std) which fully parameterize the distribution.
    print("KERNEL_OK")
</pallas_src>

<mosaic_0001>
module attributes {stable_mosaic.version = 11 : i64} {
  func.func @_mlp_policy_kernel(%arg0: i32, %arg1: memref<8x16xf32, #tpu.memory_space<vmem>>, %arg2: memref<16x32xbf16, #tpu.memory_space<vmem>>, %arg3: memref<1x32xf32, #tpu.memory_space<vmem>>, %arg4: memref<32x32xbf16, #tpu.memory_space<vmem>>, %arg5: memref<1x32xf32, #tpu.memory_space<vmem>>, %arg6: memref<32x128xbf16, #tpu.memory_space<vmem>>, %arg7: memref<1x128xf32, #tpu.memory_space<vmem>>, %arg8: memref<8x128xf32, #tpu.memory_space<vmem>>) attributes {dimension_semantics = [#tpu.dimension_semantics<parallel>], iteration_bounds = array<i64: 1>, scalar_prefetch = 0 : i64, scratch_operands = 0 : i64, tpu.core_type = #tpu.core_type<tc>, window_params = [{transform_indices = @transform_0, window_bounds = array<i64: 8, 16>}, {pipeline_mode = #tpu.pipeline_mode<synchronous>, transform_indices = @transform_1, window_bounds = array<i64: 16, 32>}, {pipeline_mode = #tpu.pipeline_mode<synchronous>, transform_indices = @transform_2, window_bounds = array<i64: 1, 32>}, {pipeline_mode = #tpu.pipeline_mode<synchronous>, transform_indices = @transform_3, window_bounds = array<i64: 32, 32>}, {pipeline_mode = #tpu.pipeline_mode<synchronous>, transform_indices = @transform_4, window_bounds = array<i64: 1, 32>}, {pipeline_mode = #tpu.pipeline_mode<synchronous>, transform_indices = @transform_5, window_bounds = array<i64: 32, 128>}, {pipeline_mode = #tpu.pipeline_mode<synchronous>, transform_indices = @transform_6, window_bounds = array<i64: 1, 128>}, {transform_indices = @transform_7, window_bounds = array<i64: 8, 128>}]} {
    %c0 = arith.constant 0 : index
    %c0_0 = arith.constant 0 : index
    %0 = vector.load %arg1[%c0, %c0_0] : memref<8x16xf32, #tpu.memory_space<vmem>>, vector<8x16xf32>
    %1 = arith.truncf %0 : vector<8x16xf32> to vector<8x16xbf16>
    %c0_1 = arith.constant 0 : index
    %c0_2 = arith.constant 0 : index
    %2 = vector.load %arg2[%c0_1, %c0_2] : memref<16x32xbf16, #tpu.memory_space<vmem>>, vector<16x32xbf16>
    %cst = arith.constant dense<0.000000e+00> : vector<8x32xf32>
    %3 = tpu.matmul %1, %2, %cst {dimension_numbers = #tpu.dot_dimension_numbers<[1], [0], [0], [1], [0, 0, 1, 1], [], []>} : vector<8x16xbf16>, vector<16x32xbf16>, vector<8x32xf32> -> vector<8x32xf32>
    %c0_3 = arith.constant 0 : index
    %c0_4 = arith.constant 0 : index
    %4 = vector.load %arg3[%c0_3, %c0_4] : memref<1x32xf32, #tpu.memory_space<vmem>>, vector<1x32xf32>
    %5 = vector.broadcast %4 : vector<1x32xf32> to vector<8x32xf32>
    %6 = arith.addf %3, %5 : vector<8x32xf32>
    %7 = math.tanh %6 : vector<8x32xf32>
    %8 = arith.truncf %7 : vector<8x32xf32> to vector<8x32xbf16>
    %c0_5 = arith.constant 0 : index
    %c0_6 = arith.constant 0 : index
    %9 = vector.load %arg4[%c0_5, %c0_6] : memref<32x32xbf16, #tpu.memory_space<vmem>>, vector<32x32xbf16>
    %cst_7 = arith.constant dense<0.000000e+00> : vector<8x32xf32>
    %10 = tpu.matmul %8, %9, %cst_7 {dimension_numbers = #tpu.dot_dimension_numbers<[1], [0], [0], [1], [0, 0, 1, 1], [], []>} : vector<8x32xbf16>, vector<32x32xbf16>, vector<8x32xf32> -> vector<8x32xf32>
    %c0_8 = arith.constant 0 : index
    %c0_9 = arith.constant 0 : index
    %11 = vector.load %arg5[%c0_8, %c0_9] : memref<1x32xf32, #tpu.memory_space<vmem>>, vector<1x32xf32>
    %12 = vector.broadcast %11 : vector<1x32xf32> to vector<8x32xf32>
    %13 = arith.addf %10, %12 : vector<8x32xf32>
    %14 = math.tanh %13 : vector<8x32xf32>
    %15 = arith.truncf %14 : vector<8x32xf32> to vector<8x32xbf16>
    %c0_10 = arith.constant 0 : index
    %c0_11 = arith.constant 0 : index
    %16 = vector.load %arg6[%c0_10, %c0_11] : memref<32x128xbf16, #tpu.memory_space<vmem>>, vector<32x128xbf16>
    %cst_12 = arith.constant dense<0.000000e+00> : vector<8x128xf32>
    %17 = tpu.matmul %15, %16, %cst_12 {dimension_numbers = #tpu.dot_dimension_numbers<[1], [0], [0], [1], [0, 0, 1, 1], [], []>} : vector<8x32xbf16>, vector<32x128xbf16>, vector<8x128xf32> -> vector<8x128xf32>
    %c0_13 = arith.constant 0 : index
    %c0_14 = arith.constant 0 : index
    %18 = vector.load %arg7[%c0_13, %c0_14] : memref<1x128xf32, #tpu.memory_space<vmem>>, vector<1x128xf32>
    %19 = vector.broadcast %18 : vector<1x128xf32> to vector<8x128xf32>
    %20 = arith.addf %17, %19 : vector<8x128xf32>
    %c0_15 = arith.constant 0 : index
    %c0_16 = arith.constant 0 : index
    %21 = vector.load %arg8[%c0_15, %c0_16] : memref<8x128xf32, #tpu.memory_space<vmem>>, vector<8x128xf32>
    tpu.vector_store %arg8[%c0_15, %c0_16], %20 {strides = array<i32>} : memref<8x128xf32, #tpu.memory_space<vmem>>, vector<8x128xf32>,
    return
  }
  func.func @transform_0(%arg0: i32) -> (i32, i32) {
    %c0_i32 = arith.constant 0 : i32
    %c0_i32_0 = arith.constant 0 : i32
    return %arg0, %c0_i32 : i32, i32
  }
  func.func @transform_1(%arg0: i32) -> (i32, i32) {
    %c0_i32 = arith.constant 0 : i32
    %c0_i32_0 = arith.constant 0 : i32
    %c0_i32_1 = arith.constant 0 : i32
    return %c0_i32, %c0_i32_0 : i32, i32
  }
  func.func @transform_2(%arg0: i32) -> (i32, i32) {
    %c0_i32 = arith.constant 0 : i32
    %c0_i32_0 = arith.constant 0 : i32
    %c0_i32_1 = arith.constant 0 : i32
    return %c0_i32, %c0_i32_0 : i32, i32
  }
  func.func @transform_3(%arg0: i32) -> (i32, i32) {
    %c0_i32 = arith.constant 0 : i32
    %c0_i32_0 = arith.constant 0 : i32
    %c0_i32_1 = arith.constant 0 : i32
    return %c0_i32, %c0_i32_0 : i32, i32
  }
  func.func @transform_4(%arg0: i32) -> (i32, i32) {
    %c0_i32 = arith.constant 0 : i32
    %c0_i32_0 = arith.constant 0 : i32
    %c0_i32_1 = arith.constant 0 : i32
    return %c0_i32, %c0_i32_0 : i32, i32
  }
  func.func @transform_5(%arg0: i32) -> (i32, i32) {
    %c0_i32 = arith.constant 0 : i32
    %c0_i32_0 = arith.constant 0 : i32
    %c0_i32_1 = arith.constant 0 : i32
    return %c0_i32, %c0_i32_0 : i32, i32
  }
  func.func @transform_6(%arg0: i32) -> (i32, i32) {
    %c0_i32 = arith.constant 0 : i32
    %c0_i32_0 = arith.constant 0 : i32
    %c0_i32_1 = arith.constant 0 : i32
    return %c0_i32, %c0_i32_0 : i32, i32
  }
  func.func @transform_7(%arg0: i32) -> (i32, i32) {
    %c0_i32 = arith.constant 0 : i32
    %c0_i32_0 = arith.constant 0 : i32
    return %arg0, %c0_i32 : i32, i32
  }
}

</mosaic_0001>

<bundles_post_ra>
// kernel: tpu_custom_call.1
= control target key start
LH: loop header
LB: loop body
LE: loop exit
PB: predicated region body
PF: predicated region fallthrough
CT: control target
= control target key end

     0   :  { %12 = vsyncpa [#allocation3], 0  ;;  %s553_s0 = inlined_call_operand.hbm [shape: f32[8,16], index: 0, kind: input, shape index: {}]   ;;  %s554_s1 = inlined_call_operand.hbm [shape: bf16[16,32], index: 1, kind: input, shape index: {}]   ;;  %s555_s2 = inlined_call_operand.vmem [shape: f32[1,32], index: 2, kind: input, shape index: {}]   ;;  %s556_s3 = inlined_call_operand.hbm [shape: bf16[32,32], index: 3, kind: input, shape index: {}]   ;;  %s557_s4 = inlined_call_operand.vmem [shape: f32[1,32], index: 4, kind: input, shape index: {}]   ;;  %s558_s5 = inlined_call_operand.vmem [shape: bf16[32,128], index: 5, kind: input, shape index: {}]   ;;  %s559_s6 = inlined_call_operand.vmem [shape: f32[1,128], index: 6, kind: input, shape index: {}]   ;;  %s560_s7 = inlined_call_operand.hbm [shape: f32[8,128], index: 7, kind: output, shape index: {}]  }
   0x1   :  { %13 = vsyncpa [#allocation6], 0 }
   0x2   :  { %14 = vsyncpa [#allocation4], 0  ;;  %s434_s24 = smov [#allocation5]   ;;  %s340_s28 = scalar_lea.hbm %s554_s1, 128 }
   0x3   :  { %s30_s25 = sshll.u32 %s434_s24, 4  ;;  %p341_p0 = scmp.ne.s32.totalorder %s554_s1, %s340_s28  ;;  %s31_s25 = int_to_ptr.vmem [resolvable:$true] %s30_s25 }
   0x4   :  { %p344_p1 = scmp.lt.u32.totalorder %s340_s28, %s554_s1 }
   0x6   :  { %p346_p2 = pnand %p344_p1, %p341_p0 }
   0x8   :  { %349 = shalt.err (!%p346_p2)
}
   0x9   :  { %s350_s10 = scalar_lea.vmem %s31_s25, 128  ;;  %p355_p4 = scmp.lt.s32.totalorder %s31_s25, %s31_s25 }
   0xa   :  { %p351_p3 = scmp.ne.s32.totalorder %s31_s25, %s350_s10  ;;  %p356_p5 = scmp.lt.s32.totalorder %s350_s10, %s350_s10 }
   0xc   :  { %p357_p6 = por %p356_p5, %p355_p4 }
   0xe   :  { %p358_p7 = pnand %p357_p6, %p351_p3 }
  0x10   :  { %361 = shalt.err (!%p358_p7)
}
  0x11   :  { %s435_s11 = smov 64   ;;  %s436_s12 = smov 4  }
  0x12   :  { %36 = dma.hbm_to_vmem [thread:$0]  %s554_s1, 128, %s31_s25, [#allocation6], %s435_s11, %s435_s11, %s436_s12  }
  0x13   :  { %s437_s15 = smov [#allocation2]   ;;  %s438_s17 = smov [#allocation7]  }
  0x14   :  { %s21_s16 = sshll.u32 %s437_s15, 4  ;;  %s44_s18 = sshll.u32 %s438_s17, 4  ;;  %s22_s16 = int_to_ptr.vmem [resolvable:$true] %s21_s16  ;;  %s45_s18 = int_to_ptr.vmem [resolvable:$true] %s44_s18 }
  0x15   :  { %s362_s21 = scalar_lea.hbm %s553_s0, 128 }
  0x16   :  { %p363_p8 = scmp.ne.s32.totalorder %s553_s0, %s362_s21  ;;  %p366_p9 = scmp.lt.u32.totalorder %s362_s21, %s553_s0 }
  0x18   :  { %p368_p10 = pnand %p366_p9, %p363_p8 }
  0x1a   :  { %371 = shalt.err (!%p368_p10)
}
  0x1b   :  { %s372_s1 = scalar_lea.vmem %s22_s16, 128  ;;  %p377_p12 = scmp.lt.s32.totalorder %s22_s16, %s22_s16 }
  0x1c   :  { %p373_p11 = scmp.ne.s32.totalorder %s22_s16, %s372_s1  ;;  %p378_p13 = scmp.lt.s32.totalorder %s372_s1, %s372_s1 }
  0x1e   :  { %p379_p0 = por %p378_p13, %p377_p12 }
  0x20   :  { %p380_p1 = pnand %p379_p0, %p373_p11 }
  0x22   :  { %383 = shalt.err (!%p380_p1)
}
  0x23   :  { %24 = dma.hbm_to_vmem [thread:$0]  %s553_s0, 128, %s22_s16, [#allocation3]  }
  0x24   :  { %s384_s30 = scalar_lea.hbm %s556_s3, 256 }
  0x25   :  { %p385_p2 = scmp.ne.s32.totalorder %s556_s3, %s384_s30  ;;  %p388_p3 = scmp.lt.u32.totalorder %s384_s30, %s556_s3 }
  0x27   :  { %p390_p4 = pnand %p388_p3, %p385_p2 }
  0x29   :  { %393 = shalt.err (!%p390_p4)
}
  0x2a   :  { %s394_s14 = scalar_lea.vmem %s45_s18, 256  ;;  %p399_p6 = scmp.lt.s32.totalorder %s45_s18, %s45_s18 }
  0x2b   :  { %p395_p5 = scmp.ne.s32.totalorder %s45_s18, %s394_s14  ;;  %p400_p7 = scmp.lt.s32.totalorder %s394_s14, %s394_s14 }
  0x2d   :  { %p401_p8 = por %p400_p7, %p399_p6 }
  0x2f   :  { %p402_p9 = pnand %p401_p8, %p395_p5 }
  0x31   :  { %405 = shalt.err (!%p402_p9)
}
  0x32   :  { %50 = dma.hbm_to_vmem [thread:$0]  %s556_s3, 256, %s45_s18, [#allocation6], %s435_s11, %s435_s11, %s436_s12  }
  0x33   :  { %428 = dma.done.wait [#allocation3], 128  }
  0x34   :  { %429 = vsyncadd [#allocation3], 4294967168 }
  0x35   :  { %430 = dma.done.wait [#allocation6], 384  }
  0x36   :  { %431 = vsyncadd [#allocation6], 4294966912  ;;  %v439_v0 = vmov 0.0   ;;  %vm440_vm0 = vmmov 0   ;;  %v331_v1 = vld [vmem:[#allocation5] sm:$0xff]   ;;  %v67_v2 = vld [vmem:[#allocation2] sm:$0xff] }
  0x37   :  { %301 = vmatprep.subr.bf16.mxu0 %v439_v0  ;;  %303 = vmatprep.mubr.msk.bf16.mxu0 %vm440_vm0, %v439_v0  ;;  %vm84_vm1 = vcmask 130048   ;;  %v68_v3 = vpack.c.bf16 %v67_v2, %v67_v2  ;;  %v332_v4 = vld [vmem:[#allocation7] sm:$0xff]   ;;  %v333_v5 = vld [vmem:[#allocation7 + $0x8] sm:$0xff]   ;;  %vm153_vm2 = vcmask 261120  }
  0x38   :  { %307 = vmatprep.subr.bf16.mxu1 %v439_v0  ;;  %311 = vmatprep.mubr.msk.bf16.mxu1 %vm440_vm0, %v439_v0  ;;  %v282_v6 = vld [vmem:[%s555_s2] ss:$0 sm:$0xff]  ;;  %v335_v15 = vld [vmem:[%s558_s5 + $0x8] sm:$0xff]  }
  0x39   :  { %302 = vmatpush3.bf16.msra.mxu0 %v331_v1  ;;  %308 = vmatpush3.bf16.msra.mxu1 %v332_v4  ;;  %v334_v14 = vld [vmem:[%s558_s5] sm:$0xff]   ;;  %s441_s5 = smov [#allocation8]  }
  0x3a   :  { %315 = vmatprep.subr.bf16.mxu0 %v439_v0  ;;  %309 = vmatprep.subr.bf16.mxu1 %v439_v0  ;;  %v285_v16 = vld [vmem:[%s557_s4] ss:$0 sm:$0xff]  ;;  %s272_s22 = sshll.u32 %s441_s5, 4  ;;  %s273_s22 = int_to_ptr.vmem [resolvable:$true] %s272_s22 }
  0x3b   :  { %v289_v24 = vld [vmem:[%s559_s6] ss:$0 sm:$0xff]  ;;  %s406_s4 = scalar_lea.vmem %s273_s22, 128  ;;  %p411_p11 = scmp.lt.s32.totalorder %s273_s22, %s273_s22 }
  0x3c   :  { %304 = vmatmul.mubr.msk.bf16.vlgmr.msra.gmra.mrb[0].mxu0 %vm84_vm1, %v68_v3  ;;  %p407_p10 = scmp.ne.s32.totalorder %s273_s22, %s406_s4  ;;  %p412_p12 = scmp.lt.s32.totalorder %s406_s4, %s406_s4 }
  0x3d   :  { %319 = vmatprep.mubr.msk.bf16.mxu0 %vm440_vm0, %v439_v0  ;;  %310 = vmatpush3.bf16.msra.mxu1 %v333_v5 }
  0x3e   :  { %316 = vmatpush3.bf16.msra.mxu0 %v334_v14  ;;  %p413_p13 = por %p412_p12, %p411_p11 }
  0x3f   :  { %317 = vmatprep.subr.bf16.mxu0 %v439_v0 }
  0x40   :  { %p414_p0 = pnand %p413_p13, %p407_p10 }
  0x42   :  { %318 = vmatpush3.bf16.msra.mxu0 %v335_v15 }
 0x10f   :  { %v122_v7 = vpop.f32.mrb[0].mxu0 }
 0x110   :  { %v123_v8 = vadd.f32 %v282_v6, %v122_v7  ;;  %v305_v9 = vpop.f32.mrb[1].mxu0 }
 0x111   :  { %v125_v10 = vpop.f32.mrb[2].mxu0 }
 0x112   :  { %336 = vtanh.f32 %v123_v8  ;;  %v306_v11 = vpop.f32.mrb[3].mxu0 }
 0x11c   :  { %v337_v12 = vpop.eup %336 }
 0x11d   :  { %v129_v13 = vpack.c.bf16 %v337_v12, %v337_v12 }
 0x11f   :  { %312 = vmatmul.mubr.msk.bf16.vlgmr.msra.gmra.mrb[0].mxu1 %vm153_vm2, %v129_v13 }
 0x1f2   :  { %v191_v17 = vpop.f32.mrb[0].mxu1 }
 0x1f3   :  { %v192_v18 = vadd.f32 %v285_v16, %v191_v17  ;;  %v313_v19 = vpop.f32.mrb[1].mxu1 }
 0x1f4   :  { %v194_v20 = vpop.f32.mrb[2].mxu1 }
 0x1f5   :  { %338 = vtanh.f32 %v192_v18  ;;  %v314_v21 = vpop.f32.mrb[3].mxu1 }
 0x1ff   :  { %v339_v22 = vpop.eup %338 }
 0x200   :  { %v198_v23 = vpack.c.bf16 %v339_v22, %v339_v22 }
 0x202   :  { %320 = vmatmul.mubr.msk.bf16.vlgmr.msra.gmra.mrb[4].mxu0 %vm153_vm2, %v198_v23 }
 0x2d5   :  { %v259_v25 = vpop.f32.mrb[4].mxu0 }
 0x2d6   :  { %v260_v26 = vadd.f32 %v289_v24, %v259_v25  ;;  %v321_v27 = vpop.f32.mrb[5].mxu0 }
 0x2d7   :  { %v262_v28 = vpop.f32.mrb[6].mxu0 }
 0x2d8   :  { %265 = vst [vmem:[#allocation8] sm:$0xff] %v260_v26  ;;  %v322_v29 = vpop.f32.mrb[7].mxu0 }
 0x2d9   :  { %417 = shalt.err (!%p414_p0)
}
 0x2da   :  { %s418_s6 = scalar_lea.hbm %s560_s7, 128 }
 0x2db   :  { %p419_p1 = scmp.ne.s32.totalorder %s560_s7, %s418_s6  ;;  %p422_p2 = scmp.lt.u32.totalorder %s418_s6, %s560_s7 }
 0x2dd   :  { %p424_p3 = pnand %p422_p2, %p419_p1 }
 0x2df   :  { %427 = shalt.err (!%p424_p3)
}
 0x2e0   :  { %275 = dma.vmem_to_hbm [thread:$0]  %s273_s22, 128, %s560_s7, [#allocation4]  }
 0x2e1   :  { %432 = dma.done.wait [#allocation4], 128  }
 0x2e2   :  { %433 = vsyncadd [#allocation4], 4294967168 }
 0x2e3   :  { %279 = vsyncpa [#allocation3], 1 }
 0x2e4   :  { %280 = vsyncpa [#allocation6], 1 }
 0x2e5   :  { %281 = vsyncpa [#allocation4], 1 }

</bundles_post_ra>
